<compile_context>
chip_gen: v6e
topology: v6e:2x2x1
jax: 0.10.0
libtpu: 0.0.40
codegen_flags: <defaults>
</compile_context>

<pallas_src>
import jax
import jax.numpy as jnp
import numpy as np
from jax.experimental import pallas as pl
from jax.experimental.pallas import tpu as pltpu

NEG_BIG = 1e30  # masking constant used by the PyTorch reference (ref impl only)


def _round_up(x, m):
    return (x + m - 1) // m * m


def _atloss_kernel(logits_ref, labels_ref, loss_ref):
    """Per row-tile: both masked cross-entropies from ONE shared exp pass.

    logits_ref: (T, L) float32, labels_ref: (T, L) bfloat16 (0/1),
    loss_ref:   (T, 1) float32 per-row loss (loss1 + loss2).
    """
    logits = logits_ref[...]                              # (T, L) f32
    labels = labels_ref[...].astype(jnp.float32)          # (T, L) f32 (0/1)

    col = jax.lax.broadcasted_iota(jnp.int32, logits.shape, dimension=1)
    is_th = col == 0
    labels = jnp.where(is_th, 0.0, labels)                # labels[:, 0] = 0

    # Shared stabilizer + single exp pass (valid for both masked softmaxes;
    # the 1e30-masked classes contribute exp(...) == 0 either way).
    m = jnp.max(logits, axis=-1, keepdims=True)           # (T, 1)
    z = logits - m
    e = jnp.exp(z)

    pos = labels > 0.0
    # denom1: positives + TH class   (p_mask = labels + th_label)
    d1 = jnp.sum(jnp.where(pos | is_th, e, 0.0), axis=-1, keepdims=True)
    # denom2: negatives + TH class   (n_mask = 1 - labels)
    d2 = jnp.sum(jnp.where(pos, 0.0, e), axis=-1, keepdims=True)

    n_pos = jnp.sum(labels, axis=-1, keepdims=True)        # (T, 1)
    wz = jnp.sum(labels * z, axis=-1, keepdims=True)        # (T, 1)

    # loss1 = -sum_j labels_j * (z_j - log d1)   (0 when the row has no positives)
    loss1 = n_pos * jnp.log(d1) - wz
    # loss2 = -(z_0 - log d2)                    (TH class is the target)
    loss2 = jnp.log(d2) - z[:, 0:1]

    loss_ref[...] = loss1 + loss2


def at_loss(logits, labels, *, tile_rows=512):
    """Pallas ATLoss forward. logits, labels: (N, L). Returns scalar mean loss."""
    n, l = logits.shape
    logits = logits.astype(jnp.float32)
    labels = labels.astype(jnp.bfloat16)      # 0/1 labels -> exact in bf16, 25% less DMA

    # Tile rows: big tiles to amortize per-grid-step overhead; multiple of 32 so
    # f32/bf16 sublane tiling constraints are always satisfied.
    tile = min(tile_rows, _round_up(n, 32))
    n_pad = _round_up(n, tile)
    if n_pad != n:
        # Padded rows are computed but sliced away before the mean, so they
        # cannot bias the result.
        logits = jnp.pad(logits, ((0, n_pad - n), (0, 0)))
        labels = jnp.pad(labels, ((0, n_pad - n), (0, 0)))

    grid = (n_pad // tile,)
    per_row = pl.pallas_call(
        _atloss_kernel,
        out_shape=jax.ShapeDtypeStruct((n_pad, 1), jnp.float32),
        grid_spec=pltpu.PrefetchScalarGridSpec(
            num_scalar_prefetch=0,
            grid=grid,
            in_specs=[
                pl.BlockSpec((tile, l), lambda i: (i, 0)),   # logits (f32)
                pl.BlockSpec((tile, l), lambda i: (i, 0)),   # labels (bf16)
            ],
            out_specs=pl.BlockSpec((tile, 1), lambda i: (i, 0)),
        ),
        compiler_params=pltpu.CompilerParams(
            # Independent row tiles -> megacore-shardable on v7x, neutral elsewhere.
            dimension_semantics=("parallel",),
        ),
    )(logits, labels)

    return jnp.sum(per_row[:n, 0]) / n


def _at_loss_reference(logits, labels):
    """Pure-JAX transcription of the PyTorch forward, for verification."""
    lab = labels.at[:, 0].set(0.0)
    th = jnp.zeros_like(lab).at[:, 0].set(1.0)
    p_mask = lab + th
    n_mask = 1.0 - lab
    logit1 = logits - (1.0 - p_mask) * NEG_BIG
    logit2 = logits - (1.0 - n_mask) * NEG_BIG
    loss1 = -(jax.nn.log_softmax(logit1, axis=-1) * lab).sum(axis=1)
    loss2 = -(jax.nn.log_softmax(logit2, axis=-1) * th).sum(axis=1)
    return (loss1 + loss2).mean()


if __name__ == "__main__":
    key = jax.random.PRNGKey(0)
    k_logits, k_labels, k_logits2, k_labels2 = jax.random.split(key, 4)

    # Case 1: 16 entity pairs, 97 relation classes (class 0 = TH/Na).
    N, L = 16, 97
    logits = jax.random.normal(k_logits, (N, L), dtype=jnp.float32)
    labels = (jax.random.uniform(k_labels, (N, L)) < 0.1).astype(jnp.float32)

    loss = at_loss(logits, labels)
    jax.block_until_ready(loss)
    ref = _at_loss_reference(logits, labels)
    assert np.allclose(np.asarray(loss), np.asarray(ref), rtol=1e-4, atol=1e-4), (
        float(loss), float(ref))

    # Case 2: exercises multi-tile grid + row padding (N not a multiple of tile).
    N2, L2 = 80, 97
    logits2 = jax.random.normal(k_logits2, (N2, L2), dtype=jnp.float32)
    labels2 = (jax.random.uniform(k_labels2, (N2, L2)) < 0.1).astype(jnp.float32)

    loss2 = at_loss(logits2, labels2, tile_rows=32)
    jax.block_until_ready(loss2)
    ref2 = _at_loss_reference(logits2, labels2)
    assert np.allclose(np.asarray(loss2), np.asarray(ref2), rtol=1e-4, atol=1e-4), (
        float(loss2), float(ref2))

    print("KERNEL_OK")
</pallas_src>

<mosaic_0001>
module attributes {stable_mosaic.version = 11 : i64} {
  func.func @_atloss_kernel(%arg0: i32, %arg1: memref<32x97xf32, #tpu.memory_space<vmem>>, %arg2: memref<32x97xbf16, #tpu.memory_space<vmem>>, %arg3: memref<32x1xf32, #tpu.memory_space<vmem>>) attributes {dimension_semantics = [#tpu.dimension_semantics<parallel>], iteration_bounds = array<i64: 1>, scalar_prefetch = 0 : i64, scratch_operands = 0 : i64, tpu.core_type = #tpu.core_type<tc>, window_params = [{transform_indices = @transform_0, window_bounds = array<i64: 32, 97>}, {transform_indices = @transform_1, window_bounds = array<i64: 32, 97>}, {transform_indices = @transform_2, window_bounds = array<i64: 32, 1>}]} {
    %c0 = arith.constant 0 : index
    %c0_0 = arith.constant 0 : index
    %0 = vector.load %arg1[%c0, %c0_0] : memref<32x97xf32, #tpu.memory_space<vmem>>, vector<32x97xf32>
    %c0_1 = arith.constant 0 : index
    %c0_2 = arith.constant 0 : index
    %1 = vector.load %arg2[%c0_1, %c0_2] : memref<32x97xbf16, #tpu.memory_space<vmem>>, vector<32x97xbf16>
    %2 = arith.extf %1 : vector<32x97xbf16> to vector<32x97xf32>
    %3 = tpu.iota {dimensions = array<i32: 1>} : vector<32x97xi32>
    %c0_i32 = arith.constant 0 : i32
    %4 = vector.broadcast %c0_i32 : i32 to vector<32x97xi32>
    %5 = arith.cmpi eq, %3, %4 : vector<32x97xi32>
    %cst = arith.constant 0.000000e+00 : f32
    %6 = vector.broadcast %cst : f32 to vector<32x97xf32>
    %7 = arith.select %5, %6, %2 : vector<32x97xi1>, vector<32x97xf32>
    %cst_3 = arith.constant dense<0xFF800000> : vector<32xf32>
    %8 = vector.multi_reduction <maximumf>, %0, %cst_3 [1] : vector<32x97xf32> to vector<32xf32>
    %9 = vector.shape_cast %8 : vector<32xf32> to vector<32x1xf32>
    %10 = vector.broadcast %9 : vector<32x1xf32> to vector<32x97xf32>
    %11 = arith.subf %0, %10 : vector<32x97xf32>
    %12 = math.exp %11 : vector<32x97xf32>
    %cst_4 = arith.constant 0.000000e+00 : f32
    %13 = vector.broadcast %cst_4 : f32 to vector<32x97xf32>
    %14 = arith.cmpf ogt, %7, %13 : vector<32x97xf32>
    %15 = arith.ori %14, %5 : vector<32x97xi1>
    %cst_5 = arith.constant 0.000000e+00 : f32
    %16 = vector.broadcast %cst_5 : f32 to vector<32x97xf32>
    %17 = arith.select %15, %12, %16 : vector<32x97xi1>, vector<32x97xf32>
    %cst_6 = arith.constant dense<0.000000e+00> : vector<32xf32>
    %18 = vector.multi_reduction <add>, %17, %cst_6 [1] : vector<32x97xf32> to vector<32xf32>
    %19 = vector.shape_cast %18 : vector<32xf32> to vector<32x1xf32>
    %cst_7 = arith.constant 0.000000e+00 : f32
    %20 = vector.broadcast %cst_7 : f32 to vector<32x97xf32>
    %21 = arith.select %14, %20, %12 : vector<32x97xi1>, vector<32x97xf32>
    %cst_8 = arith.constant dense<0.000000e+00> : vector<32xf32>
    %22 = vector.multi_reduction <add>, %21, %cst_8 [1] : vector<32x97xf32> to vector<32xf32>
    %23 = vector.shape_cast %22 : vector<32xf32> to vector<32x1xf32>
    %cst_9 = arith.constant dense<0.000000e+00> : vector<32xf32>
    %24 = vector.multi_reduction <add>, %7, %cst_9 [1] : vector<32x97xf32> to vector<32xf32>
    %25 = vector.shape_cast %24 : vector<32xf32> to vector<32x1xf32>
    %26 = arith.mulf %7, %11 : vector<32x97xf32>
    %cst_10 = arith.constant dense<0.000000e+00> : vector<32xf32>
    %27 = vector.multi_reduction <add>, %26, %cst_10 [1] : vector<32x97xf32> to vector<32xf32>
    %28 = vector.shape_cast %27 : vector<32xf32> to vector<32x1xf32>
    %29 = math.log %19 : vector<32x1xf32>
    %30 = arith.mulf %25, %29 : vector<32x1xf32>
    %31 = arith.subf %30, %28 : vector<32x1xf32>
    %32 = math.log %23 : vector<32x1xf32>
    %33 = vector.extract_strided_slice %11 {offsets = [0, 0], sizes = [32, 1], strides = [1, 1]} : vector<32x97xf32> to vector<32x1xf32>
    %34 = arith.subf %32, %33 : vector<32x1xf32>
    %35 = arith.addf %31, %34 : vector<32x1xf32>
    %c0_11 = arith.constant 0 : index
    %c0_12 = arith.constant 0 : index
    %36 = vector.load %arg3[%c0_11, %c0_12] : memref<32x1xf32, #tpu.memory_space<vmem>>, vector<32x1xf32>
    tpu.vector_store %arg3[%c0_11, %c0_12], %35 {strides = array<i32>} : memref<32x1xf32, #tpu.memory_space<vmem>>, vector<32x1xf32>,
    return
  }
  func.func @transform_0(%arg0: i32) -> (i32, i32) {
    %c0_i32 = arith.constant 0 : i32
    %c0_i32_0 = arith.constant 0 : i32
    return %arg0, %c0_i32 : i32, i32
  }
  func.func @transform_1(%arg0: i32) -> (i32, i32) {
    %c0_i32 = arith.constant 0 : i32
    %c0_i32_0 = arith.constant 0 : i32
    return %arg0, %c0_i32 : i32, i32
  }
  func.func @transform_2(%arg0: i32) -> (i32, i32) {
    %c0_i32 = arith.constant 0 : i32
    %c0_i32_0 = arith.constant 0 : i32
    return %arg0, %c0_i32 : i32, i32
  }
}

</mosaic_0001>

<bundles_post_ra>
// kernel: tpu_custom_call.1
= control target key start
LH: loop header
LB: loop body
LE: loop exit
PB: predicated region body
PF: predicated region fallthrough
CT: control target
= control target key end

     0   :  { %7 = vsyncpa [#allocation3], 0  ;;  %s376_s0 = inlined_call_operand.hbm [shape: f32[32,97], index: 0, kind: input, shape index: {}]   ;;  %s377_s1 = inlined_call_operand.hbm [shape: bf16[32,97], index: 1, kind: input, shape index: {}]   ;;  %s378_s2 = inlined_call_operand.vmem [shape: f32[32,1], index: 2, kind: output, shape index: {}]  }
   0x1   :  { %8 = vsyncpa [#allocation5], 0  ;;  %s277_s9 = smov [#allocation2]  }
   0x2   :  { %s14_s10 = sshll.u32 %s277_s9, 4  ;;  %s15_s10 = int_to_ptr.vmem [resolvable:$true] %s14_s10 }
   0x3   :  { %s241_s11 = scalar_lea.vmem %s15_s10, 512  ;;  %p246_p1 = scmp.lt.s32.totalorder %s15_s10, %s15_s10 }
   0x4   :  { %p242_p0 = scmp.ne.s32.totalorder %s15_s10, %s241_s11  ;;  %p247_p2 = scmp.lt.s32.totalorder %s241_s11, %s241_s11 }
   0x6   :  { %p248_p3 = por %p247_p2, %p246_p1 }
   0x8   :  { %p249_p4 = pnand %p248_p3, %p242_p0 }
   0xa   :  { %252 = shalt.err (!%p249_p4)
}
   0xb   :  { %s278_s12 = smov 128   ;;  %s279_s13 = smov 8  }
   0xc   :  { %20 = dma.hbm_to_vmem [thread:$0]  %s376_s0, 512, %s15_s10, [#allocation3], %s278_s12, %s278_s12, %s279_s13  }
   0xd   :  { %s280_s16 = smov [#allocation4]  }
   0xe   :  { %s26_s17 = sshll.u32 %s280_s16, 4  ;;  %s27_s17 = int_to_ptr.vmem [resolvable:$true] %s26_s17 }
   0xf   :  { %s261_s18 = scalar_lea.vmem %s27_s17, 256  ;;  %p266_p6 = scmp.lt.s32.totalorder %s27_s17, %s27_s17 }
  0x10   :  { %p262_p5 = scmp.ne.s32.totalorder %s27_s17, %s261_s18  ;;  %p267_p7 = scmp.lt.s32.totalorder %s261_s18, %s261_s18 }
  0x12   :  { %p268_p8 = por %p267_p7, %p266_p6 }
  0x14   :  { %p269_p9 = pnand %p268_p8, %p262_p5 }
  0x16   :  { %272 = shalt.err (!%p269_p9)
}
  0x17   :  { %s281_s19 = smov 64   ;;  %s282_s20 = smov 4  }
  0x18   :  { %32 = dma.hbm_to_vmem [thread:$0]  %s377_s1, 256, %s27_s17, [#allocation5], %s281_s19, %s281_s19, %s282_s20  }
  0x19   :  { %273 = dma.done.wait [#allocation3], 512  }
  0x1a   :  { %274 = vsyncadd [#allocation3], 4294966784 }
  0x1b   :  { %275 = dma.done.wait [#allocation5], 256  }
  0x1c   :  { %276 = vsyncadd [#allocation5], 4294967040  ;;  %vm58_vm0 = vcmask 793600   ;;  %v39_v0 = vld [vmem:[#allocation2] sm:$0xff]  ;;  %v41_v1 = vld [vmem:[#allocation2 + $0x10] sm:$0xff]  ;;  %v51_v12 = vlaneseq  ;;  %vm183_vm10 = vcmask 7168  }
  0x1d   :  { %v40_v2 = vld [vmem:[#allocation2 + $0x8] sm:$0xff]  ;;  %v59_v3 = vsel %vm58_vm0, %v39_v0, -inf  ;;  %v65_v4 = vsel %vm58_vm0, %v41_v1, -inf  ;;  %v42_v5 = vld [vmem:[#allocation2 + $0x18] sm:$0xff]  ;;  %v195_v19 = vld [vmem:[#allocation4] sm:$0xff]  }
  0x1e   :  { %60 = vmax.xlane.f32.xlu0 %v59_v3  ;;  %66 = vmax.xlane.f32.xlu1 %v65_v4  ;;  %v62_v6 = vsel %vm58_vm0, %v40_v2, -inf  ;;  %v68_v7 = vsel %vm58_vm0, %v42_v5, -inf  ;;  %v52_v20 = vand.u32 127, %v51_v12  ;;  %v202_v21 = vld [vmem:[#allocation4 + $0x8] sm:$0xff]   ;;  %v196_v24 = vunpack.c.l.bf16 %v195_v19 }
  0x1f   :  { %v200_v25 = vunpack.c.l.bf16 %v202_v21  ;;  %v197_v27 = vunpack.c.h.bf16 %v195_v19  ;;  %v201_v29 = vunpack.c.h.bf16 %v202_v21 }
  0x20   :  { %vm53_vm1 = vcmp.eq.s32.totalorder %v52_v20, 0 }
  0x21   :  { %v54_v26 = vsel %vm53_vm1, 0.0, %v196_v24  ;;  %v56_v28 = vsel %vm53_vm1, 0.0, %v200_v25  ;;  %v55_v30 = vsel %vm53_vm1, 0.0, %v197_v27  ;;  %v57_v31 = vsel %vm53_vm1, 0.0, %v201_v29 }
  0x22   :  { %63 = vmax.xlane.f32.xlu0 %v62_v6  ;;  %69 = vmax.xlane.f32.xlu1 %v68_v7  ;;  %vm83_vm2 = vcmp.gt.f32.partialorder %v54_v26, 0.0  ;;  %vm85_vm3 = vcmp.gt.f32.partialorder %v56_v28, 0.0  ;;  %vm84_vm6 = vcmp.gt.f32.partialorder %v55_v30, 0.0  ;;  %vm86_vm7 = vcmp.gt.f32.partialorder %v57_v31, 0.0 }
  0x23   :  { %vm87_vm4 = vmor %vm83_vm2, %vm53_vm1  ;;  %v123_v51 = vsel %vm58_vm0, %v54_v26, 0.0  ;;  %v129_v53 = vsel %vm58_vm0, %v56_v28, 0.0  ;;  %v126_v54 = vsel %vm58_vm0, %v55_v30, 0.0  ;;  %v132_v56 = vsel %vm58_vm0, %v57_v31, 0.0 }
  0x24   :  { %vm89_vm5 = vmor %vm85_vm3, %vm53_vm1 }
  0x25   :  { %vm88_vm8 = vmor %vm84_vm6, %vm53_vm1 }
  0x26   :  { %vm90_vm9 = vmor %vm86_vm7, %vm53_vm1 }
  0xa7   :  { %v61_v8 = vpop.xlane.xlu0 %60  ;;  %v67_v9 = vpop.xlane.xlu1 %66 }
  0xa8   :  { %v308_v10 = vsub.f32 %v39_v0, %v61_v8  ;;  %v310_v11 = vsub.f32 %v41_v1, %v67_v9 }
  0xaa   :  { %v75_v13 = vmul.f32 1.442695, %v308_v10  ;;  %v79_v14 = vmul.f32 1.442695, %v310_v11  ;;  %v135_v55 = vmul.f32 %v308_v10, %v54_v26  ;;  %v137_v58 = vmul.f32 %v310_v11, %v56_v28 }
  0xab   :  { %v64_v15 = vpop.xlane.xlu0 %63  ;;  %v70_v16 = vpop.xlane.xlu1 %69 }
  0xac   :  { %209 = vpow2.f32 %v75_v13  ;;  %v314_v17 = vsub.f32 %v40_v2, %v64_v15  ;;  %v316_v18 = vsub.f32 %v42_v5, %v70_v16  ;;  %v139_v57 = vsel %vm58_vm0, %v135_v55, 0.0 }
  0xad   :  { %211 = vpow2.f32 %v79_v14  ;;  %v145_v60 = vsel %vm58_vm0, %v137_v58, 0.0 }
  0xae   :  { %v77_v22 = vmul.f32 1.442695, %v314_v17  ;;  %v81_v23 = vmul.f32 1.442695, %v316_v18  ;;  %v136_v59 = vmul.f32 %v314_v17, %v55_v30  ;;  %v138_v62 = vmul.f32 %v316_v18, %v57_v31 }
  0xb0   :  { %213 = vpow2.f32 %v77_v22  ;;  %v142_v61 = vsel %vm58_vm0, %v136_v59, 0.0  ;;  %v148_v63 = vsel %vm58_vm0, %v138_v62, 0.0 }
  0xb1   :  { %215 = vpow2.f32 %v81_v23 }
  0xb9   :  { %v210_v32 = vpop.eup %209 }
  0xba   :  { %v212_v33 = vpop.eup %211  ;;  %v91_v34 = vsel %vm87_vm4, %v210_v32, 0.0  ;;  %v107_v43 = vsel %vm83_vm2, 0.0, %v210_v32 }
  0xbb   :  { %v95_v35 = vsel %vm58_vm0, %v91_v34, 0.0  ;;  %v93_v36 = vsel %vm89_vm5, %v212_v33, 0.0  ;;  %v111_v45 = vsel %vm58_vm0, %v107_v43, 0.0  ;;  %v109_v46 = vsel %vm85_vm3, 0.0, %v212_v33 }
  0xbc   :  { %96 = vadd.xlane.f32.xlu0 %v95_v35  ;;  %v101_v38 = vsel %vm58_vm0, %v93_v36, 0.0  ;;  %v117_v48 = vsel %vm58_vm0, %v109_v46, 0.0 }
  0xbd   :  { %v214_v37 = vpop.eup %213 }
  0xbe   :  { %v216_v39 = vpop.eup %215  ;;  %v92_v40 = vsel %vm88_vm8, %v214_v37, 0.0  ;;  %v108_v47 = vsel %vm84_vm6, 0.0, %v214_v37 }
  0xbf   :  { %v98_v41 = vsel %vm58_vm0, %v92_v40, 0.0  ;;  %v94_v42 = vsel %vm90_vm9, %v216_v39, 0.0  ;;  %v114_v49 = vsel %vm58_vm0, %v108_v47, 0.0  ;;  %v110_v50 = vsel %vm86_vm7, 0.0, %v216_v39 }
  0xc0   :  { %102 = vadd.xlane.f32.xlu0 %v101_v38  ;;  %99 = vadd.xlane.f32.xlu1 %v98_v41  ;;  %v104_v44 = vsel %vm58_vm0, %v94_v42, 0.0  ;;  %v120_v52 = vsel %vm58_vm0, %v110_v50, 0.0 }
  0xc4   :  { %112 = vadd.xlane.f32.xlu0 %v111_v45  ;;  %105 = vadd.xlane.f32.xlu1 %v104_v44 }
  0xc8   :  { %118 = vadd.xlane.f32.xlu0 %v117_v48  ;;  %115 = vadd.xlane.f32.xlu1 %v114_v49 }
  0xcc   :  { %124 = vadd.xlane.f32.xlu0 %v123_v51  ;;  %121 = vadd.xlane.f32.xlu1 %v120_v52 }
  0xd0   :  { %130 = vadd.xlane.f32.xlu0 %v129_v53  ;;  %127 = vadd.xlane.f32.xlu1 %v126_v54 }
  0xd4   :  { %140 = vadd.xlane.f32.xlu0 %v139_v57  ;;  %133 = vadd.xlane.f32.xlu1 %v132_v56 }
  0xd8   :  { %146 = vadd.xlane.f32.xlu0 %v145_v60  ;;  %143 = vadd.xlane.f32.xlu1 %v142_v61 }
  0xdc   :  { %149 = vadd.xlane.f32.xlu1 %v148_v63 }
 0x145   :  { %v97_v0 = vpop.xlane.xlu0 %96 }
 0x146   :  { %217 = vlog2.f32 %v97_v0 }
 0x149   :  { %v100_v1 = vpop.xlane.xlu1 %99  ;;  %v103_v2 = vpop.xlane.xlu0 %102 }
 0x14a   :  { %219 = vlog2.f32 %v100_v1 }
 0x14b   :  { %221 = vlog2.f32 %v103_v2 }
 0x14d   :  { %v106_v3 = vpop.xlane.xlu1 %105  ;;  %v113_v4 = vpop.xlane.xlu0 %112 }
 0x14e   :  { %223 = vlog2.f32 %v113_v4 }
 0x14f   :  { %225 = vlog2.f32 %v106_v3 }
 0x151   :  { %v116_v5 = vpop.xlane.xlu1 %115  ;;  %v119_v6 = vpop.xlane.xlu0 %118 }
 0x152   :  { %227 = vlog2.f32 %v116_v5 }
 0x153   :  { %229 = vlog2.f32 %v119_v6  ;;  %v218_v7 = vpop.eup %217 }
 0x154   :  { %v152_v13 = vmul.f32 0.6931472, %v218_v7 }
 0x155   :  { %v122_v8 = vpop.xlane.xlu1 %121  ;;  %v125_v9 = vpop.xlane.xlu0 %124 }
 0x156   :  { %231 = vlog2.f32 %v122_v8  ;;  %v159_v20 = vmul.f32 %v152_v13, %v125_v9 }
 0x157   :  { %v220_v12 = vpop.eup %219 }
 0x158   :  { %v222_v14 = vpop.eup %221  ;;  %v154_v21 = vmul.f32 0.6931472, %v220_v12 }
 0x159   :  { %v128_v15 = vpop.xlane.xlu1 %127  ;;  %v131_v16 = vpop.xlane.xlu0 %130  ;;  %v156_v22 = vmul.f32 0.6931472, %v222_v14 }
 0x15a   :  { %v160_v32 = vmul.f32 %v154_v21, %v128_v15 }
 0x15b   :  { %v224_v19 = vpop.eup %223  ;;  %v161_v33 = vmul.f32 %v156_v22, %v131_v16 }
 0x15c   :  { %v226_v23 = vpop.eup %225  ;;  %v168_v24 = vmul.f32 0.6931472, %v224_v19 }
 0x15d   :  { %v134_v25 = vpop.xlane.xlu1 %133  ;;  %v141_v26 = vpop.xlane.xlu0 %140  ;;  %v158_v34 = vmul.f32 0.6931472, %v226_v23 }
 0x15e   :  { %v163_v27 = vsub.f32 %v159_v20, %v141_v26  ;;  %v175_v29 = vsub.f32 %v168_v24, %v308_v10 }
 0x15f   :  { %v228_v28 = vpop.eup %227  ;;  %v162_v44 = vmul.f32 %v158_v34, %v134_v25 }
 0x160   :  { %v230_v30 = vpop.eup %229  ;;  %v170_v31 = vmul.f32 0.6931472, %v228_v28  ;;  %v179_v36 = vadd.f32 %v175_v29, %v163_v27 }
 0x161   :  { %v172_v35 = vmul.f32 0.6931472, %v230_v30  ;;  %v144_v37 = vpop.xlane.xlu1 %143  ;;  %v147_v38 = vpop.xlane.xlu0 %146 }
 0x162   :  { %v176_v39 = vsub.f32 %v170_v31, %v314_v17  ;;  %v164_v40 = vsub.f32 %v160_v32, %v144_v37  ;;  %v165_v41 = vsub.f32 %v161_v33, %v147_v38  ;;  %184 = vst.msk [vmem:[%s378_s2] sm:$0xff] %vm183_vm10, %v179_v36 }
 0x163   :  { %v232_v42 = vpop.eup %231  ;;  %v177_v10 = vsub.f32 %v172_v35, %v310_v11 }
 0x164   :  { %v174_v43 = vmul.f32 0.6931472, %v232_v42  ;;  %v180_v45 = vadd.f32 %v176_v39, %v164_v40 }
 0x165   :  { %v181_v46 = vadd.f32 %v177_v10, %v165_v41  ;;  %v150_v47 = vpop.xlane.xlu1 %149 }
 0x166   :  { %185 = vst.msk [vmem:[%s378_s2 + $0x8] sm:$0xff] %vm183_vm10, %v180_v45  ;;  %v178_v17 = vsub.f32 %v174_v43, %v316_v18  ;;  %v166_v48 = vsub.f32 %v162_v44, %v150_v47 }
 0x167   :  { %186 = vst.msk [vmem:[%s378_s2 + $0x10] sm:$0xff] %vm183_vm10, %v181_v46 }
 0x168   :  { %v182_v49 = vadd.f32 %v178_v17, %v166_v48 }
 0x16a   :  { %187 = vst.msk [vmem:[%s378_s2 + $0x18] sm:$0xff] %vm183_vm10, %v182_v49 }
 0x16b   :  { %192 = vsyncpa [#allocation3], 1 }
 0x16c   :  { %193 = vsyncpa [#allocation5], 1 }

</bundles_post_ra>
